<compile_context>
chip_gen: v7x
topology: tpu7x:2x2x1
jax: 0.10.0
libtpu: 0.0.40
codegen_flags: <defaults>
</compile_context>

<pallas_src>
import functools
import math

import jax
import jax.numpy as jnp
from jax.experimental import pallas as pl
from jax.experimental.pallas import tpu as pltpu

# Matmul tile preferences (per perf review: M-heavy tiles, 256-wide N tiles,
# >=384-wide K tiles when K is large, bf16 operands with f32 accumulation;
# sized well under the 32 MiB scoped-VMEM default so the same tiling is safe on
# v5e / v6e / v7x, including v7x's 64 MiB physical VMEM).
_TM, _TN, _TK = 512, 256, 512
_K_FULL_MAX = 2048          # K <= this -> single K block (no k-grid, no scratch)
_VMEM_LIMIT = 32 * 1024 * 1024


def _round_up(x, m):
    return ((x + m - 1) // m) * m


def _pick_m(m):
    if m <= _TM:
        p = _round_up(m, 8)
        return p, p
    d = _TM
    while d >= 64:
        if m % d == 0:
            return d, m
        d -= 8
    return _TM, _round_up(m, _TM)


def _pick_k(k):
    if k <= _K_FULL_MAX:
        p = _round_up(k, 8)
        return p, p
    d = _TK
    while d >= 128:
        if k % d == 0:
            return d, k
        d -= 128
    return _TK, _round_up(k, _TK)


def _pick_n(n):
    if n <= _TN:
        return n, n
    d = _TN
    while d >= 128:
        if n % d == 0:
            return d, n
        d -= 128
    return _TN, _round_up(n, _TN)


# ----------------------------- Pallas kernels -----------------------------

def _apply_act(y, act):
    if act == "relu":
        return jnp.maximum(y, 0.0)
    if act == "sigmoid":
        return jax.nn.sigmoid(y)
    return y


def _mm_kernel_single(a_ref, b_ref, s_ref, t_ref, o_ref, *, act):
    # Single K block: no accumulator scratch, no zero-init branch.
    y = jnp.dot(a_ref[...].astype(jnp.bfloat16), b_ref[...],
                preferred_element_type=jnp.float32)
    y = y * s_ref[...] + t_ref[...]
    o_ref[...] = _apply_act(y, act).astype(o_ref.dtype)


def _mm_kernel_multi(a_ref, b_ref, s_ref, t_ref, o_ref, acc_ref, *, act):
    k = pl.program_id(2)

    @pl.when(k == 0)
    def _():
        acc_ref[...] = jnp.zeros_like(acc_ref)

    acc_ref[...] += jnp.dot(a_ref[...].astype(jnp.bfloat16), b_ref[...],
                            preferred_element_type=jnp.float32)

    @pl.when(k == pl.num_programs(2) - 1)
    def _():
        y = acc_ref[...] * s_ref[...] + t_ref[...]
        o_ref[...] = _apply_act(y, act).astype(o_ref.dtype)


def pallas_matmul(a, b, scale, shift, act="none"):
    """act((a @ b) * scale + shift);  a:(M,K) f32|bf16,  b:(K,N),  scale/shift:(N,).

    bf16 MXU matmul with f32 accumulation and a fused per-column epilogue."""
    M, K = a.shape
    N = b.shape[1]
    Mb, Mp = _pick_m(M)
    Kb, Kp = _pick_k(K)
    Nb, Np = _pick_n(N)

    a_p = a
    if (Mp, Kp) != (M, K):
        a_p = jnp.pad(a, ((0, Mp - M), (0, Kp - K)))
    b_p = b.astype(jnp.bfloat16)
    if (Kp, Np) != (K, N):
        b_p = jnp.pad(b_p, ((0, Kp - K), (0, Np - N)))
    s_p = scale.reshape(1, -1).astype(jnp.float32)
    t_p = shift.reshape(1, -1).astype(jnp.float32)
    if Np != N:
        s_p = jnp.pad(s_p, ((0, 0), (0, Np - N)))
        t_p = jnp.pad(t_p, ((0, 0), (0, Np - N)))

    gm, gn, gk = Mp // Mb, Np // Nb, Kp // Kb
    cost = pl.CostEstimate(
        flops=2 * M * N * K,
        transcendentals=(M * N if act == "sigmoid" else 0),
        bytes_accessed=int(a_p.size * a_p.dtype.itemsize
                           + b_p.size * b_p.dtype.itemsize + Mp * Np * 4))

    if gk == 1:
        out = pl.pallas_call(
            functools.partial(_mm_kernel_single, act=act),
            out_shape=jax.ShapeDtypeStruct((Mp, Np), jnp.float32),
            grid=(gm, gn),
            in_specs=[
                pl.BlockSpec((Mb, Kb), lambda i, j: (i, 0)),
                pl.BlockSpec((Kb, Nb), lambda i, j: (0, j)),
                pl.BlockSpec((1, Nb), lambda i, j: (0, j)),
                pl.BlockSpec((1, Nb), lambda i, j: (0, j)),
            ],
            out_specs=pl.BlockSpec((Mb, Nb), lambda i, j: (i, j)),
            compiler_params=pltpu.CompilerParams(
                dimension_semantics=("parallel", "parallel"),
                vmem_limit_bytes=_VMEM_LIMIT),
            cost_estimate=cost,
        )(a_p, b_p, s_p, t_p)
    else:
        out = pl.pallas_call(
            functools.partial(_mm_kernel_multi, act=act),
            out_shape=jax.ShapeDtypeStruct((Mp, Np), jnp.float32),
            grid_spec=pltpu.PrefetchScalarGridSpec(
                num_scalar_prefetch=0,
                grid=(gm, gn, gk),
                in_specs=[
                    pl.BlockSpec((Mb, Kb), lambda i, j, k: (i, k)),
                    pl.BlockSpec((Kb, Nb), lambda i, j, k: (k, j)),
                    pl.BlockSpec((1, Nb), lambda i, j, k: (0, j)),
                    pl.BlockSpec((1, Nb), lambda i, j, k: (0, j)),
                ],
                out_specs=pl.BlockSpec((Mb, Nb), lambda i, j, k: (i, j)),
                scratch_shapes=[pltpu.VMEM((Mb, Nb), jnp.float32)]),
            compiler_params=pltpu.CompilerParams(
                dimension_semantics=("parallel", "parallel", "arbitrary"),
                vmem_limit_bytes=_VMEM_LIMIT),
            cost_estimate=cost,
        )(a_p, b_p, s_p, t_p)

    if (Mp, Np) != (M, N):
        out = out[:M, :N]
    return out


def _bmul_kernel(x_ref, g_ref, o_ref):
    # g block may be (1,TR,C), (1,1,C) or (1,TR,1); in-kernel broadcast multiply.
    o_ref[...] = x_ref[...] * g_ref[...]


@jax.jit
def pallas_mul(a, b):
    """Elementwise a*b (NHWC) through a Pallas kernel.

    The smaller operand ((N,1,1,C) or (N,H,W,1)) is broadcast via the BlockSpec
    index_map instead of being materialized in HBM."""
    shape = jnp.broadcast_shapes(a.shape, b.shape)
    if a.ndim != 4 or b.ndim != 4:
        return (jnp.broadcast_to(a, shape) *
                jnp.broadcast_to(b, shape)).astype(jnp.float32)
    if tuple(a.shape) == tuple(shape):
        x, g = a, b
    elif tuple(b.shape) == tuple(shape):
        x, g = b, a
    else:
        x = jnp.broadcast_to(a, shape)
        g = jnp.broadcast_to(b, shape)
    x = x.astype(jnp.float32)
    g = g.astype(jnp.float32)

    N, H, W, C = x.shape
    gN, gH, gW, gC = g.shape
    if gN != N:
        g = jnp.broadcast_to(g, (N, gH, gW, gC))
    R = H * W
    gR = gH * gW
    if gR not in (1, R) or gC not in (1, C):
        g = jnp.broadcast_to(g, x.shape)
        gR, gC = R, C
    x3 = x.reshape(N, R, C)
    g3 = g.reshape(N, gR, gC)

    # row tiling: ~1 MiB blocks, prefer full extent / exact divisors (no pad).
    if R * C * 4 <= (2 << 20):
        TR, Rp = R, R
    else:
        pref = max(8, (min(2048, (1 << 20) // (C * 4)) // 8) * 8)
        if R <= pref:
            TR, Rp = R, R
        else:
            TR = None
            d = pref
            while d >= 8:
                if R % d == 0:
                    TR = d
                    break
                d -= 8
            if TR is None:
                TR = pref
                Rp = _round_up(R, TR)
            else:
                Rp = R
    if Rp != R:
        x3 = jnp.pad(x3, ((0, 0), (0, Rp - R), (0, 0)))
        if gR == R:
            g3 = jnp.pad(g3, ((0, 0), (0, Rp - R), (0, 0)))

    gr_blk = TR if gR == R else 1
    gc_blk = C if gC == C else 1
    if gR == R:
        g_map = lambda n, r: (n, r, 0)
    else:
        g_map = lambda n, r: (n, 0, 0)

    out = pl.pallas_call(
        _bmul_kernel,
        out_shape=jax.ShapeDtypeStruct((N, Rp, C), jnp.float32),
        grid=(N, Rp // TR),
        in_specs=[
            pl.BlockSpec((1, TR, C), lambda n, r: (n, r, 0)),
            pl.BlockSpec((1, gr_blk, gc_blk), g_map),
        ],
        out_specs=pl.BlockSpec((1, TR, C), lambda n, r: (n, r, 0)),
        compiler_params=pltpu.CompilerParams(
            dimension_semantics=("parallel", "parallel"),
            vmem_limit_bytes=_VMEM_LIMIT),
        cost_estimate=pl.CostEstimate(
            flops=N * Rp * C, transcendentals=0,
            bytes_accessed=int(x3.size * 4 + g3.size * 4 + N * Rp * C * 4)),
    )(x3, g3)
    if Rp != R:
        out = out[:, :R, :]
    return out.reshape(N, H, W, C)


# --------------------------- conv / pooling glue ---------------------------

@functools.partial(jax.jit,
                   static_argnames=("stride", "padding", "dilation", "act"))
def conv2d(x, w, bias=None, bn=None, *, stride=1, padding=0, dilation=1,
           act="none"):
    """NHWC conv; w in PyTorch OIHW layout; optional bias / inference BN / act."""
    N, H, W, Cin = x.shape
    Cout, _, kh, kw = w.shape
    sh, sw = (stride, stride) if isinstance(stride, int) else stride
    ph, pw = (padding, padding) if isinstance(padding, int) else padding
    dh, dw = (dilation, dilation) if isinstance(dilation, int) else dilation
    Ho = (H + 2 * ph - dh * (kh - 1) - 1) // sh + 1
    Wo = (W + 2 * pw - dw * (kw - 1) - 1) // sw + 1

    if kh == 1 and kw == 1 and ph == 0 and pw == 0:
        # 1x1 conv: A is the activation itself (no im2col, no copy, no
        # transpose); it is cast to bf16 inside the Pallas kernel.
        xs = x if (sh == 1 and sw == 1) else x[:, ::sh, ::sw, :]
        A = xs.reshape(N * Ho * Wo, Cin)
        B = w.reshape(Cout, Cin).T
    else:
        # kxk conv: bf16 NHWC im2col (single materialization, channel-last).
        xp = jnp.pad(x.astype(jnp.bfloat16),
                     ((0, 0), (ph, ph), (pw, pw), (0, 0)))
        cols = []
        for i in range(kh):
            for j in range(kw):
                sl = jax.lax.slice(
                    xp, (0, i * dh, j * dw, 0),
                    (N, i * dh + (Ho - 1) * sh + 1,
                     j * dw + (Wo - 1) * sw + 1, Cin),
                    (1, sh, sw, 1))
                cols.append(sl)
        A = jnp.concatenate(cols, axis=-1).reshape(N * Ho * Wo, kh * kw * Cin)
        B = w.transpose(2, 3, 1, 0).reshape(kh * kw * Cin, Cout)

    scale = jnp.ones((Cout,), jnp.float32)
    shift = (jnp.zeros((Cout,), jnp.float32) if bias is None
             else bias.astype(jnp.float32))
    if bn is not None:
        gamma, beta, mean, var, eps = bn
        s = gamma / jnp.sqrt(var + eps)
        shift = beta + (shift - mean) * s
        scale = s
    y = pallas_matmul(A, B, scale, shift, act=act)
    return y.reshape(N, Ho, Wo, Cout)


@jax.jit
def batchnorm(x, bn):
    gamma, beta, mean, var, eps = bn
    s = gamma / jnp.sqrt(var + eps)
    return x * s + (beta - mean * s)          # channels-last broadcast


@functools.partial(jax.jit, static_argnames=("k", "stride", "padding"))
def maxpool2d(x, *, k, stride, padding=0):
    return jax.lax.reduce_window(
        x, jnp.array(-jnp.inf, x.dtype), jax.lax.max,
        (1, k, k, 1), (1, stride, stride, 1),
        ((0, 0), (padding, padding), (padding, padding), (0, 0)))


@functools.partial(jax.jit, static_argnames=("k", "stride"))
def avgpool2d(x, *, k, stride):
    s = jax.lax.reduce_window(
        x, jnp.array(0.0, x.dtype), jax.lax.add,
        (1, k, k, 1), (1, stride, stride, 1), "VALID")
    return s / float(k * k)


@functools.partial(jax.jit,
                   static_argnames=("out_h", "out_w", "align_corners"))
def bilinear_resize(x, *, out_h, out_w, align_corners):
    N, H, W, C = x.shape

    def coords(out_n, in_n):
        if align_corners:
            if out_n == 1:
                return jnp.zeros((1,), jnp.float32)
            return jnp.linspace(0.0, in_n - 1.0, out_n, dtype=jnp.float32)
        src = (jnp.arange(out_n, dtype=jnp.float32) + 0.5) * (in_n / out_n) - 0.5
        return jnp.clip(src, 0.0, in_n - 1.0)

    ys, xs = coords(out_h, H), coords(out_w, W)
    y0 = jnp.floor(ys).astype(jnp.int32)
    x0 = jnp.floor(xs).astype(jnp.int32)
    y1 = jnp.minimum(y0 + 1, H - 1)
    x1 = jnp.minimum(x0 + 1, W - 1)
    wy = (ys - y0.astype(jnp.float32))[None, :, None, None]
    wx = (xs - x0.astype(jnp.float32))[None, None, :, None]
    top = x[:, y0, :, :] * (1.0 - wy) + x[:, y1, :, :] * wy
    out = top[:, :, x0, :] * (1.0 - wx) + top[:, :, x1, :] * wx
    return out


def upsample(x, scale, align_corners=True):
    return bilinear_resize(x, out_h=x.shape[1] * scale,
                           out_w=x.shape[2] * scale,
                           align_corners=align_corners)


# ------------------------- parameter initialization ------------------------

class Init:
    def __init__(self, seed=1):
        self._key = jax.random.PRNGKey(seed)

    def key(self):
        self._key, k = jax.random.split(self._key)
        return k

    def conv(self, cout, cin, kh, kw):
        fan = cin * kh * kw
        return (jax.random.normal(self.key(), (cout, cin, kh, kw), jnp.float32)
                * (1.0 / math.sqrt(fan)))

    def bias(self, c):
        return 0.01 * jax.random.normal(self.key(), (c,), jnp.float32)

    def bn(self, c):
        gamma = 1.0 + 0.01 * jax.random.normal(self.key(), (c,), jnp.float32)
        beta = 0.01 * jax.random.normal(self.key(), (c,), jnp.float32)
        mean = jnp.zeros((c,), jnp.float32)
        var = jnp.ones((c,), jnp.float32)
        return (gamma, beta, mean, var, 1e-5)


def make_conv(ini, cin, cout, k, stride=1, padding=0, bias=True):
    kh, kw = (k, k) if isinstance(k, int) else k
    return dict(w=ini.conv(cout, cin, kh, kw),
                b=ini.bias(cout) if bias else None,
                stride=stride, padding=padding)


def plain_conv(p, x, act="none", bn=None):
    return conv2d(x, p["w"], p["b"], bn, stride=p["stride"],
                  padding=p["padding"], act=act)


def make_basic_conv(ini, cin, cout, k, stride=1, padding=0, dilation=1,
                    relu=False):
    kh, kw = (k, k) if isinstance(k, int) else k
    return dict(w=ini.conv(cout, cin, kh, kw), bn=ini.bn(cout),
                stride=stride, padding=padding, dilation=dilation, relu=relu)


def basic_conv(p, x):
    return conv2d(x, p["w"], None, p["bn"], stride=p["stride"],
                  padding=p["padding"], dilation=p["dilation"],
                  act="relu" if p["relu"] else "none")


# ------------------------------ sub-modules --------------------------------

def make_gated_conv(ini, cin, cout):
    return dict(w=ini.conv(cout, cin, 1, 1),
                att_bn0=ini.bn(cin + 1),
                att_conv1=make_conv(ini, cin + 1, cin + 1, 1),
                att_conv2=make_conv(ini, cin + 1, 1, 1),
                att_bn1=ini.bn(1))


def gated_conv(p, feat, gate):
    x = jnp.concatenate([feat, gate], axis=-1)
    x = batchnorm(x, p["att_bn0"])
    x = plain_conv(p["att_conv1"], x, act="relu")
    att = plain_conv(p["att_conv2"], x, bn=p["att_bn1"], act="sigmoid")
    return conv2d(pallas_mul(feat, att + 1.0), p["w"])


def make_basic_block(ini, cin, cout):
    return dict(conv1=ini.conv(cout, cin, 3, 3), bn1=ini.bn(cout),
                conv2=ini.conv(cout, cout, 3, 3), bn2=ini.bn(cout))


def basic_block(p, x):
    out = conv2d(x, p["conv1"], None, p["bn1"], padding=1, act="relu")
    out = conv2d(out, p["conv2"], None, p["bn2"], padding=1)
    return jnp.maximum(out + x, 0.0)


def make_boundary(ini):
    return dict(res2_conv=make_conv(ini, 512, 1, 1),
                res3_conv=make_conv(ini, 1024, 1, 1),
                res4_conv=make_conv(ini, 2048, 1, 1),
                res1=make_basic_block(ini, 64, 64),
                res2=make_basic_block(ini, 32, 32),
                res3=make_basic_block(ini, 16, 16),
                res1_pre=make_conv(ini, 64, 32, 1),
                res2_pre=make_conv(ini, 32, 16, 1),
                res3_pre=make_conv(ini, 16, 8, 1),
                gate1=make_gated_conv(ini, 32, 32),
                gate2=make_gated_conv(ini, 16, 16),
                gate3=make_gated_conv(ini, 8, 8),
                gate=make_conv(ini, 8, 1, 1, bias=False),
                fuse=make_conv(ini, 2, 1, 1, bias=False))


def boundary_forward(p, x0, x2, x3, x4, sobel):
    res2 = upsample(plain_conv(p["res2_conv"], x2), 2, True)
    res3 = upsample(plain_conv(p["res3_conv"], x3), 4, True)
    res4 = upsample(plain_conv(p["res4_conv"], x4), 8, True)
    gate1 = gated_conv(p["gate1"],
                       plain_conv(p["res1_pre"], basic_block(p["res1"], x0)),
                       res2)
    gate2 = gated_conv(p["gate2"],
                       plain_conv(p["res2_pre"], basic_block(p["res2"], gate1)),
                       res3)
    gate3 = gated_conv(p["gate3"],
                       plain_conv(p["res3_pre"], basic_block(p["res3"], gate2)),
                       res4)
    gate4 = plain_conv(p["gate"], gate3)
    gateforedge = upsample(gate4, 4, True)
    feat = plain_conv(p["fuse"],
                      jnp.concatenate([gateforedge, sobel], axis=-1),
                      act="sigmoid")
    return gate1, gate2, gate3, gateforedge, feat


def make_ca(ini, cin):
    return dict(fc1=ini.conv(cin // 16, cin, 1, 1),
                fc2=ini.conv(cin, cin // 16, 1, 1))


def channel_attention(p, x):
    avg = jnp.mean(x, axis=(1, 2), keepdims=True)
    mx = jnp.max(x, axis=(1, 2), keepdims=True)

    def f(v):
        return conv2d(conv2d(v, p["fc1"], act="relu"), p["fc2"])

    return jax.nn.sigmoid(f(avg) + f(mx))


def make_msca(ini, channels=32, r=4):
    oc = channels // r
    return dict(l_conv1=make_conv(ini, channels, oc, 1), l_bn1=ini.bn(oc),
                l_conv2=make_conv(ini, oc, channels, 1), l_bn2=ini.bn(channels),
                g_conv1=make_conv(ini, channels, oc, 1), g_bn1=ini.bn(oc),
                g_conv2=make_conv(ini, oc, channels, 1), g_bn2=ini.bn(channels))


def msca(p, x):
    xl = plain_conv(p["l_conv1"], x, bn=p["l_bn1"], act="relu")
    xl = plain_conv(p["l_conv2"], xl, bn=p["l_bn2"])
    g = jnp.mean(x, axis=(1, 2), keepdims=True)
    xg = plain_conv(p["g_conv1"], g, bn=p["g_bn1"], act="relu")
    xg = plain_conv(p["g_conv2"], xg, bn=p["g_bn2"])
    return jax.nn.sigmoid(xl + xg)


def make_dgcm(ini, channel=32):
    return dict(h2l=make_basic_conv(ini, channel, channel, 3, padding=1, relu=True),
                h2h=make_basic_conv(ini, channel, channel, 3, padding=1, relu=True),
                mscah=make_msca(ini), mscal=make_msca(ini),
                conv=make_basic_conv(ini, channel, channel, 3, padding=1, relu=True))


def dgcm(p, x, gate):
    gate = maxpool2d(gate, k=32, stride=32)
    x_h = basic_conv(p["h2h"], x)
    x_l = basic_conv(p["h2l"], avgpool2d(x, k=2, stride=2))
    x_h = pallas_mul(x_h, msca(p["mscah"], x_h))
    x_l = pallas_mul(x_l, msca(p["mscal"], x_l))
    out = bilinear_resize(x_l, out_h=x_h.shape[1], out_w=x_h.shape[2],
                          align_corners=False) + x_h
    out = basic_conv(p["conv"], out)
    out = pallas_mul(out, gate) + out
    out = basic_conv(p["conv"], out)
    return out


def make_fuse(ini, edge_channel, channel=32):
    return dict(edge_conv=make_conv(ini, edge_channel, edge_channel, 3,
                                    stride=2, padding=1),
                edge_conv1=make_basic_conv(ini, edge_channel, 1, 1, relu=True),
                high_conv1=make_basic_conv(ini, channel, channel, 3,
                                           padding=1, relu=True),
                low_conv=make_basic_conv(ini, channel, channel, 3,
                                         padding=1, relu=True),
                conv1=make_conv(ini, channel * 3, channel * 3, 3, padding=1),
                conv2=make_basic_conv(ini, channel * 3, channel, 1, relu=True))


def fuse_model(p, high, low, edge):
    H = low.shape[1]
    if H == 22:
        e = basic_conv(p["edge_conv1"],
                       plain_conv(p["edge_conv"], plain_conv(p["edge_conv"], edge)))
    elif H == 44:
        e = basic_conv(p["edge_conv1"], plain_conv(p["edge_conv"], edge))
    else:
        e = basic_conv(p["edge_conv1"], edge)
    low_f = basic_conv(p["low_conv"], low)
    high_f = basic_conv(p["high_conv1"], upsample(high, 2, True))
    out1 = pallas_mul(low_f, high_f)
    out2 = pallas_mul(low_f, e)
    out = basic_conv(p["conv2"],
                     plain_conv(p["conv1"],
                                jnp.concatenate([out1, out2, low_f], axis=-1)))
    return out


def make_rf(ini, cin, cout):
    return dict(
        b0=make_basic_conv(ini, cin, cout, 1),
        b1=[make_basic_conv(ini, cin, cout, 1),
            make_basic_conv(ini, cout, cout, (1, 3), padding=(0, 1)),
            make_basic_conv(ini, cout, cout, (3, 1), padding=(1, 0)),
            make_basic_conv(ini, cout, cout, 3, padding=3, dilation=3)],
        b2=[make_basic_conv(ini, cin, cout, 1),
            make_basic_conv(ini, cout, cout, (1, 5), padding=(0, 2)),
            make_basic_conv(ini, cout, cout, (5, 1), padding=(2, 0)),
            make_basic_conv(ini, cout, cout, 3, padding=5, dilation=5)],
        b3=[make_basic_conv(ini, cin, cout, 1),
            make_basic_conv(ini, cout, cout, (1, 7), padding=(0, 3)),
            make_basic_conv(ini, cout, cout, (7, 1), padding=(3, 0)),
            make_basic_conv(ini, cout, cout, 3, padding=7, dilation=7)],
        conv_cat=make_basic_conv(ini, 4 * cout, cout, 3, padding=1),
        conv_res=make_basic_conv(ini, cin, cout, 1))


def rf(p, x):
    def seq(ps, v):
        for q in ps:
            v = basic_conv(q, v)
        return v

    x0 = basic_conv(p["b0"], x)
    x1 = seq(p["b1"], x)
    x2 = seq(p["b2"], x)
    x3 = seq(p["b3"], x)
    xc = basic_conv(p["conv_cat"], jnp.concatenate([x0, x1, x2, x3], axis=-1))
    return jnp.maximum(xc + basic_conv(p["conv_res"], x), 0.0)


def make_sa(ini):
    return dict(w=ini.conv(1, 2, 7, 7))


def spatial_attention(p, x):
    avg = jnp.mean(x, axis=-1, keepdims=True)
    mx = jnp.max(x, axis=-1, keepdims=True)
    return conv2d(jnp.concatenate([avg, mx], axis=-1), p["w"],
                  padding=3, act="sigmoid")


# ------------------------------- backbone ----------------------------------

def make_bottleneck(ini, cin, planes, stride):
    cout = planes * 4
    return dict(conv1=ini.conv(planes, cin, 1, 1), bn1=ini.bn(planes),
                conv2=ini.conv(planes, planes, 3, 3), bn2=ini.bn(planes),
                conv3=ini.conv(cout, planes, 1, 1), bn3=ini.bn(cout),
                down_w=ini.conv(cout, cin, 1, 1), down_bn=ini.bn(cout),
                stride=stride)


def bottleneck(p, x):
    out = conv2d(x, p["conv1"], None, p["bn1"], act="relu")
    out = conv2d(out, p["conv2"], None, p["bn2"], stride=p["stride"],
                 padding=1, act="relu")
    out = conv2d(out, p["conv3"], None, p["bn3"])
    idn = conv2d(x, p["down_w"], None, p["down_bn"], stride=p["stride"])
    return jnp.maximum(out + idn, 0.0)


def make_resnet(ini):
    return dict(conv1=ini.conv(64, 3, 7, 7), bn1=ini.bn(64),
                layer1=make_bottleneck(ini, 64, 64, 1),
                layer2=make_bottleneck(ini, 256, 128, 2),
                layer3_1=make_bottleneck(ini, 512, 256, 2),
                layer4_1=make_bottleneck(ini, 1024, 512, 2))


# -------------------------------- SINet ------------------------------------

def make_sinet(ini, channel=32):
    return dict(resnet=make_resnet(ini),
                spachannel=make_sa(ini),
                ca1=make_ca(ini, 512), ca2=make_ca(ini, 1024),
                ca3=make_ca(ini, 2048),
                rf01=make_rf(ini, 320, channel), rf2=make_rf(ini, 3584, channel),
                rf3=make_rf(ini, 3072, channel), rf4=make_rf(ini, 2048, channel),
                dgcm=make_dgcm(ini, channel),
                fuse3=make_fuse(ini, 8), fuse2=make_fuse(ini, 8),
                fuse1=make_fuse(ini, 8),
                soble_bn=ini.bn(3),
                edge=make_boundary(ini),
                toone=make_conv(ini, 3, 1, 1, bias=False),
                conv_to1_res=make_basic_conv(ini, 32, 32, 3, padding=1),
                conv_to2_res=make_basic_conv(ini, 32, 1, 1),
                conv=make_basic_conv(ini, 4, 1, 1))


def sinet_forward(p, x_nchw):
    # public interface is NCHW like PyTorch; run everything NHWC internally.
    x = x_nchw.transpose(0, 2, 3, 1)

    # fixed Sobel-like edge filter built in forward() of the PyTorch module
    sob = jnp.array([[-1., -1., -1.], [-1., 8., -1.], [-1., -1., -1.]],
                    jnp.float32) / 3.0
    sobel_w = jnp.broadcast_to(sob, (3, 3, 3, 3))
    edge_detect = conv2d(x, sobel_w, None, p["soble_bn"], padding=1, act="relu")

    r = p["resnet"]
    h = conv2d(x, r["conv1"], None, r["bn1"], stride=2, padding=3, act="relu")
    x0 = maxpool2d(h, k=3, stride=2, padding=1)
    x1 = bottleneck(r["layer1"], x0)
    x2 = bottleneck(r["layer2"], x1)
    x3 = bottleneck(r["layer3_1"], x2)
    x4 = bottleneck(r["layer4_1"], x3)

    x01 = jnp.concatenate([x0, x1], axis=-1)
    x01_sa = pallas_mul(spatial_attention(p["spachannel"], x01), x01)
    x2_ca = channel_attention(p["ca1"], x2)
    x3_ca = channel_attention(p["ca2"], x3)
    x4_ca = channel_attention(p["ca3"], x4)

    x2w = pallas_mul(x2_ca, x2)
    x3w = pallas_mul(x3_ca, x3)
    x4w = pallas_mul(x4_ca, x4)
    x2_cat = jnp.concatenate([x2w, upsample(x3w, 2, True),
                              upsample(upsample(x4w, 2, True), 2, True)],
                             axis=-1)
    x3_cat = jnp.concatenate([x3w, upsample(x4w, 2, True)], axis=-1)

    x01_rf = rf(p["rf01"], x01_sa)
    x2_rf = rf(p["rf2"], x2_cat)
    x3_rf = rf(p["rf3"], x3_cat)
    x4_rf = rf(p["rf4"], x4w)

    edge_detect = plain_conv(p["toone"], edge_detect)
    edge2, edge3, edge4, edgeres, edgewithsobel = boundary_forward(
        p["edge"], x0, x2, x3, x4, edge_detect)

    x4_res = dgcm(p["dgcm"], x4_rf, edgewithsobel)
    x3_res = fuse_model(p["fuse3"], x4_res, x3_rf, edge4)
    x2_res = fuse_model(p["fuse2"], x3_res, x2_rf, edge4)
    x1_res = fuse_model(p["fuse1"], x2_res, x01_rf, edge4)

    def head(t):
        t = basic_conv(p["conv_to2_res"], basic_conv(p["conv_to1_res"], t))
        return bilinear_resize(t, out_h=352, out_w=352, align_corners=False)

    x4_o, x3_o, x2_o, x1_o = head(x4_res), head(x3_res), head(x2_res), head(x1_res)
    net_res = basic_conv(p["conv"],
                         jnp.concatenate([x1_o, x2_o, x3_o, x4_o], axis=-1))
    outs = (x4_o, x3_o, x2_o, x1_o, edgeres, net_res)
    return tuple(o.transpose(0, 3, 1, 2) for o in outs)   # back to NCHW


# --------------------------------- main -------------------------------------

if __name__ == "__main__":
    # 352x352 is required by the module (hard-coded H==22 / H==44 branches in
    # FuseModel, MaxPool2d(32) gate, fixed (352,352) output interpolation);
    # batch=1 keeps it small.
    params = make_sinet(Init(seed=1))
    x = jax.random.normal(jax.random.PRNGKey(0), (1, 3, 352, 352), jnp.float32)
    outs = sinet_forward(params, x)
    outs = jax.block_until_ready(outs)
    assert all(o.shape == (1, 1, 352, 352) for o in outs)
    assert bool(jnp.isfinite(outs[-1]).all())
    print("KERNEL_OK")
</pallas_src>

<mosaic_0001>
module attributes {stable_mosaic.version = 11 : i64} {
  func.func @_mm_kernel_single(%arg0: i32, %arg1: i32, %arg2: memref<512x32xbf16, #tpu.memory_space<vmem>>, %arg3: memref<32x3xbf16, #tpu.memory_space<vmem>>, %arg4: memref<1x3xf32, #tpu.memory_space<vmem>>, %arg5: memref<1x3xf32, #tpu.memory_space<vmem>>, %arg6: memref<512x3xf32, #tpu.memory_space<vmem>>) attributes {dimension_semantics = [#tpu.dimension_semantics<parallel>, #tpu.dimension_semantics<parallel>], iteration_bounds = array<i64: 242, 1>, scalar_prefetch = 0 : i64, scratch_operands = 0 : i64, tpu.core_type = #tpu.core_type<tc>, window_params = [{transform_indices = @transform_0, window_bounds = array<i64: 512, 32>}, {transform_indices = @transform_1, window_bounds = array<i64: 32, 3>}, {transform_indices = @transform_2, window_bounds = array<i64: 1, 3>}, {transform_indices = @transform_3, window_bounds = array<i64: 1, 3>}, {transform_indices = @transform_4, window_bounds = array<i64: 512, 3>}]} {
    %c0 = arith.constant 0 : index
    %c0_0 = arith.constant 0 : index
    %0 = vector.load %arg2[%c0, %c0_0] : memref<512x32xbf16, #tpu.memory_space<vmem>>, vector<512x32xbf16>
    %c0_1 = arith.constant 0 : index
    %c0_2 = arith.constant 0 : index
    %1 = vector.load %arg3[%c0_1, %c0_2] : memref<32x3xbf16, #tpu.memory_space<vmem>>, vector<32x3xbf16>
    %cst = arith.constant dense<0.000000e+00> : vector<512x3xf32>
    %2 = tpu.matmul %0, %1, %cst {dimension_numbers = #tpu.dot_dimension_numbers<[1], [0], [0], [1], [0, 0, 1, 1], [], []>} : vector<512x32xbf16>, vector<32x3xbf16>, vector<512x3xf32> -> vector<512x3xf32>
    %c0_3 = arith.constant 0 : index
    %c0_4 = arith.constant 0 : index
    %3 = vector.load %arg4[%c0_3, %c0_4] : memref<1x3xf32, #tpu.memory_space<vmem>>, vector<1x3xf32>
    %4 = vector.broadcast %3 : vector<1x3xf32> to vector<512x3xf32>
    %5 = arith.mulf %2, %4 : vector<512x3xf32>
    %c0_5 = arith.constant 0 : index
    %c0_6 = arith.constant 0 : index
    %6 = vector.load %arg5[%c0_5, %c0_6] : memref<1x3xf32, #tpu.memory_space<vmem>>, vector<1x3xf32>
    %7 = vector.broadcast %6 : vector<1x3xf32> to vector<512x3xf32>
    %8 = arith.addf %5, %7 : vector<512x3xf32>
    %cst_7 = arith.constant 0.000000e+00 : f32
    %9 = vector.broadcast %cst_7 : f32 to vector<512x3xf32>
    %10 = arith.maximumf %8, %9 : vector<512x3xf32>
    %c0_8 = arith.constant 0 : index
    %c0_9 = arith.constant 0 : index
    %11 = vector.load %arg6[%c0_8, %c0_9] : memref<512x3xf32, #tpu.memory_space<vmem>>, vector<512x3xf32>
    tpu.vector_store %arg6[%c0_8, %c0_9], %10 {strides = array<i32>} : memref<512x3xf32, #tpu.memory_space<vmem>>, vector<512x3xf32>,
    return
  }
  func.func @transform_0(%arg0: i32, %arg1: i32) -> (i32, i32) {
    %c0_i32 = arith.constant 0 : i32
    %c0_i32_0 = arith.constant 0 : i32
    return %arg0, %c0_i32 : i32, i32
  }
  func.func @transform_1(%arg0: i32, %arg1: i32) -> (i32, i32) {
    %c0_i32 = arith.constant 0 : i32
    %c0_i32_0 = arith.constant 0 : i32
    return %c0_i32, %arg1 : i32, i32
  }
  func.func @transform_2(%arg0: i32, %arg1: i32) -> (i32, i32) {
    %c0_i32 = arith.constant 0 : i32
    %c0_i32_0 = arith.constant 0 : i32
    return %c0_i32, %arg1 : i32, i32
  }
  func.func @transform_3(%arg0: i32, %arg1: i32) -> (i32, i32) {
    %c0_i32 = arith.constant 0 : i32
    %c0_i32_0 = arith.constant 0 : i32
    return %c0_i32, %arg1 : i32, i32
  }
  func.func @transform_4(%arg0: i32, %arg1: i32) -> (i32, i32) {
    %c0_i32 = arith.constant 0 : i32
    return %arg0, %arg1 : i32, i32
  }
}

</mosaic_0001>

<bundles_post_ra>
// kernel: conv2d.1
= control target key start
LH: loop header
LB: loop body
LE: loop exit
PB: predicated region body
PF: predicated region fallthrough
CT: control target
= control target key end

     0   :  { %9 = vsyncpa [#allocation3], 0  ;;  %s2131_s0 = inlined_call_operand.vmem [shape: bf16[123904,32], index: 0, kind: input, shape index: {}]   ;;  %s2132_s1 = inlined_call_operand.vmem [shape: bf16[32,3], index: 1, kind: input, shape index: {}]   ;;  %s2133_s2 = inlined_call_operand.vmem [shape: f32[1,3], index: 2, kind: input, shape index: {}]   ;;  %s2134_s3 = inlined_call_operand.vmem [shape: f32[1,3], index: 3, kind: input, shape index: {}]   ;;  %s2135_s4 = inlined_call_operand.hbm [shape: f32[123904,3], index: 4, kind: output, shape index: {}]  }
   0x1   :  { %11 = vsyncpa [#allocation3 + $0x1], 0  ;;  %s1672_s15 = smov 0   ;;  %s1674_s16 = smov 0  }
   0x2   :  { %s1676_s17 = smov 0   ;;  %s1678_s18 = smov 0  }
   0x3   :  { %s1680_s19 = smov 0   ;;  %s1682_s20 = smov 0  }
   0x4 LB: > { %s1282_s21 = sadd.s32 4294967295, %s1642_s20   ;;  %s1283_s22 = sadd.s32 4294967294, %s1642_s20   ;;  %s1642_s20 = sphi %s1682_s20, %s17_s20   ;;  %s1638_s19 = sphi %s1680_s19, %s2142_s19   ;;  %s1634_s18 = sphi %s1678_s18, %s2141_s18   ;;  %s1630_s17 = sphi %s1676_s17, %s2140_s17   ;;  %s1626_s16 = sphi %s1674_s16, %s2139_s16   ;;  %s1622_s15 = sphi %s1672_s15, %s2138_s15  }
   0x5   : > { %s29_s23 = sadd.s32 1, %s1638_s19  ;;  %s142_s24 = sadd.s32 1, %s1630_s17 }
   0x6   : > { %p31_p0 = scmp.ge.s32.totalorder %s29_s23, 242  ;;  %p152_p1 = scmp.ne.s32.totalorder %s1630_s17, %s1626_s16 }
   0x7   : > { %p153_p2 = scmp.eq.s32.totalorder %s1282_s21, 241  ;;  %p158_p3 = scmp.ne.s32.totalorder %s1626_s16, %s1622_s15 }
   0x8   : > { %s2144_s23 = smov (%p31_p0, %s29_s23), 0  ;;  %p159_p5 = scmp.eq.s32.totalorder %s1283_s22, 241 }
   0x9   : > { %p1712_p4 = por %p153_p2, %p152_p1  ;;  %s137_s26 = ssub.s32 %s1638_s19, %s2144_s23 }
   0xa   : > { %p1289_p6 = scmp.ge.s32.totalorder %s1642_s20, 1  ;;  %p140_p7 = scmp.eq.s32.totalorder %s137_s26, 0 }
   0xb   : > { %p1719_p8 = por %p159_p5, %p158_p3  ;;  %p205_p9 = scmp.lt.s32.totalorder %s1642_s20, 243 }
   0xc   : > { %s1725_s28 = scalar_select %p140_p7, %s1630_s17, %s142_s24  }
   0xd   : > { %p206_p10 = pnand %p1289_p6, %p205_p9 }
   0xe   : > { %v1530_v0 = vld [vmem:[%s2132_s1] sm:$0xff] (!%p206_p10)   ;;  %s1291_s5 = sshll.u32 (!%p206_p10), %s1634_s18, 6  ;;  %v1531_v1 = vld [vmem:[%s2132_s1 + $0x8] sm:$0xff] (!%p206_p10)   ;;  %vm499_vm0 = vcmask (!%p206_p10), 261120   ;;  %s238_s12 = sand.u32 (!%p206_p10), 1, %s1626_s16   ;;  %vm1091_vm1 = vcmask (!%p206_p10), 23552  }
   0xf   : > { %209 = sbr.rel (%p206_p10) target bundleno = 320 (0x140), region = 36  ;;  %p242_p11 = scmp.lt.s32.totalorder (!%p206_p10), %s1291_s5, 15487  ;;  %1401 = vmatprep.subr.bf16.mxu0 (!%p206_p10), %v1530_v0  ;;  %1469 = vmatprep.subr.bf16.mxu1 (!%p206_p10), %v1530_v0  ;;  %v1807_v34 = vld [vmem:[%s2133_s2] ss:$0 sm:$0xff] (!%p206_p10) }
  0x10   : > { %1402 = vmatpush3.bf16.msra.mxu0 (!%p206_p10), %v1530_v0  ;;  %1471 = vmatpush3.bf16.msra.mxu1 (!%p206_p10), %v1530_v0  ;;  %v1812_v36 = vld [vmem:[%s2134_s3] ss:$0 sm:$0xff] (!%p206_p10)  ;;  %s1290_s24 = sshll.u32 (!%p206_p10), %s238_s12, 9  ;;  %s1366_s29 = sshll.u32 (!%p206_p10), %s1634_s18, 13 }
  0x11   : > { %1403 = vmatprep.subr.bf16.mxu0 (!%p206_p10), %v1531_v1  ;;  %1470 = vmatprep.subr.bf16.mxu1 (!%p206_p10), %v1531_v1  ;;  %s1831_s26 = scalar_lea.vmem (!%p206_p10), [#allocation2], %s1290_s24  ;;  %s2069_s6 = scalar_lea.hbm (!%p206_p10), %s2135_s4, %s1366_s29 }
  0x12   : > { %s1171_s30 = sshll.u32 (!%p206_p10), %s1831_s26, 4  ;;  %s2085_s7 = scalar_lea.sflag (!%p206_p10), [#allocation3], %s238_s12  ;;  %s2071_s30 = int_to_ptr.vmem [resolvable:$true] %s1171_s30 }
  0x13   : > { %s1644_s9 = smov (!%p206_p10), [#allocation2]  }
  0x14   : > { %1404 = vmatpush3.bf16.msra.mxu0 (!%p206_p10), %v1531_v1  ;;  %1472 = vmatpush3.bf16.msra.mxu1 (!%p206_p10), %v1531_v1  ;;  %s1568_s10 = sshll.u32 (!%p206_p10), %s1644_s9, 4  ;;  %s1569_s10 = int_to_ptr.vmem [resolvable:$false] %s1568_s10 }
  0x15   : > { %p1571_p1 = scmp.lt.s32.totalorder (!%p206_p10), %s2071_s30, %s1569_s10 }
  0x16   : > { %s2146_s5 = smov (!%p242_p11, %s1291_s5), 15487 }
  0x17   : > { %s1292_s8 = sshll.u32 %s2146_s5, 2 }
  0x18   : > { %s1737_s11 = scalar_lea.vmem %s2131_s0, %s1292_s8  ;;  %s1564_s8 = scalar_lea.vmem %s2071_s30, 8192 }
  0x19   : > { %v1532_v2 = vld [vmem:[%s1737_s11] sm:$0xff]   ;;  %v1534_v4 = vld [vmem:[%s1737_s11 + $0x8] sm:$0xff]   ;;  %v1536_v6 = vld [vmem:[%s1737_s11 + $0x10] sm:$0xff]   ;;  %p1565_p12 = scmp.ne.s32.totalorder %s2071_s30, %s1564_s8 }
  0x1a   : > { %v1533_v3 = vld [vmem:[%s1737_s11 + $0x80] sm:$0xff]   ;;  %1405 = vmatprep.mubr.msk.bf16.mxu0 %vm499_vm0, %v1532_v2  ;;  %v1535_v5 = vld [vmem:[%s1737_s11 + $0x88] sm:$0xff]   ;;  %v1537_v7 = vld [vmem:[%s1737_s11 + $0x90] sm:$0xff]  }
  0x1b   : > { %1437 = vmatprep.mubr.msk.bf16.mxu1 %vm499_vm0, %v1533_v3  ;;  %1406 = vmatmul.mubr.msk.bf16.vlgmr.msra.gmra.mrb[0].mxu0 %vm499_vm0, %v1534_v4  ;;  %v1538_v8 = vld [vmem:[%s1737_s11 + $0x18] sm:$0xff]   ;;  %v1540_v10 = vld [vmem:[%s1737_s11 + $0x20] sm:$0xff]   ;;  %v1542_v12 = vld [vmem:[%s1737_s11 + $0x28] sm:$0xff]   ;;  %p1566_p13 = pnand %p1565_p12, %p1712_p4 }
  0x1c   : > { %1438 = vmatmul.mubr.msk.bf16.vlgmr.msra.gmra.mrb[0].mxu1 %vm499_vm0, %v1535_v5  ;;  %1409 = vmatprep.mubr.msk.bf16.mxu0 %vm499_vm0, %v1536_v6  ;;  %v1539_v9 = vld [vmem:[%s1737_s11 + $0x98] sm:$0xff]   ;;  %v1541_v11 = vld [vmem:[%s1737_s11 + $0xa0] sm:$0xff]   ;;  %v1543_v13 = vld [vmem:[%s1737_s11 + $0xa8] sm:$0xff]  }
  0x1d   : > { %1441 = vmatprep.mubr.msk.bf16.mxu1 %vm499_vm0, %v1537_v7  ;;  %v1544_v14 = vld [vmem:[%s1737_s11 + $0x30] sm:$0xff]   ;;  %v1546_v16 = vld [vmem:[%s1737_s11 + $0x38] sm:$0xff]   ;;  %v1548_v18 = vld [vmem:[%s1737_s11 + $0x40] sm:$0xff]   ;;  %p1567_p0 = pneg %p1566_p13 }
  0x1e   : > { %v1545_v15 = vld [vmem:[%s1737_s11 + $0xb0] sm:$0xff]   ;;  %v1547_v17 = vld [vmem:[%s1737_s11 + $0xb8] sm:$0xff]   ;;  %v1549_v19 = vld [vmem:[%s1737_s11 + $0xc0] sm:$0xff]  }
  0x1f   : > { %v1550_v20 = vld [vmem:[%s1737_s11 + $0x48] sm:$0xff]   ;;  %v1552_v22 = vld [vmem:[%s1737_s11 + $0x50] sm:$0xff]   ;;  %v1554_v24 = vld [vmem:[%s1737_s11 + $0x58] sm:$0xff]  }
  0x20   : > { %v1551_v21 = vld [vmem:[%s1737_s11 + $0xc8] sm:$0xff]   ;;  %v1553_v23 = vld [vmem:[%s1737_s11 + $0xd0] sm:$0xff]   ;;  %v1555_v25 = vld [vmem:[%s1737_s11 + $0xd8] sm:$0xff]  }
  0x21   : > { %v1556_v26 = vld [vmem:[%s1737_s11 + $0x60] sm:$0xff]   ;;  %v1558_v28 = vld [vmem:[%s1737_s11 + $0x68] sm:$0xff]   ;;  %v1560_v30 = vld [vmem:[%s1737_s11 + $0x70] sm:$0xff]  }
  0x22   : > { %v1557_v27 = vld [vmem:[%s1737_s11 + $0xe0] sm:$0xff]   ;;  %v1559_v29 = vld [vmem:[%s1737_s11 + $0xe8] sm:$0xff]   ;;  %v1561_v31 = vld [vmem:[%s1737_s11 + $0xf0] sm:$0xff]  }
  0x23   : > { %1410 = vmatmul.mubr.msk.bf16.gmra.mrb[4].mxu0 %vm499_vm0, %v1538_v8  ;;  %v1562_v32 = vld [vmem:[%s1737_s11 + $0x78] sm:$0xff]  }
  0x24   : > { %1442 = vmatmul.mubr.msk.bf16.gmra.mrb[4].mxu1 %vm499_vm0, %v1539_v9  ;;  %1413 = vmatprep.mubr.msk.bf16.mxu0 %vm499_vm0, %v1540_v10  ;;  %v1563_v33 = vld [vmem:[%s1737_s11 + $0xf8] sm:$0xff]   ;;  %s1570_s11 = scalar_lea.vmem %s1569_s10, 16384 }
  0x25   : > { %1445 = vmatprep.mubr.msk.bf16.mxu1 %vm499_vm0, %v1541_v11  ;;  %p1572_p2 = scmp.lt.s32.totalorder %s1570_s11, %s1564_s8 }
  0x27   : > { %p1573_p3 = por %p1572_p2, %p1571_p1 }
  0x29   : > { %p1574_p5 = pnand %p1573_p3, %p1567_p0 }
  0x2b   : > { %1414 = vmatmul.mubr.msk.bf16.gmra.mrb[8].mxu0 %vm499_vm0, %v1542_v12 }
  0x2c   : > { %1446 = vmatmul.mubr.msk.bf16.gmra.mrb[8].mxu1 %vm499_vm0, %v1543_v13  ;;  %1417 = vmatprep.mubr.msk.bf16.mxu0 %vm499_vm0, %v1544_v14 }
  0x2d   : > { %1449 = vmatprep.mubr.msk.bf16.mxu1 %vm499_vm0, %v1545_v15 }
  0x33   : > { %1418 = vmatmul.mubr.msk.bf16.gmra.mrb[12].mxu0 %vm499_vm0, %v1546_v16 }
  0x34   : > { %1450 = vmatmul.mubr.msk.bf16.gmra.mrb[12].mxu1 %vm499_vm0, %v1547_v17  ;;  %1421 = vmatprep.mubr.msk.bf16.mxu0 %vm499_vm0, %v1548_v18 }
  0x35   : > { %1453 = vmatprep.mubr.msk.bf16.mxu1 %vm499_vm0, %v1549_v19 }
  0x3b   : > { %1422 = vmatmul.mubr.msk.bf16.gmra.mrb[16].mxu0 %vm499_vm0, %v1550_v20 }
  0x3c   : > { %1454 = vmatmul.mubr.msk.bf16.gmra.mrb[16].mxu1 %vm499_vm0, %v1551_v21  ;;  %1425 = vmatprep.mubr.msk.bf16.mxu0 %vm499_vm0, %v1552_v22 }
  0x3d   : > { %1457 = vmatprep.mubr.msk.bf16.mxu1 %vm499_vm0, %v1553_v23 }
  0x43   : > { %1426 = vmatmul.mubr.msk.bf16.gmra.mrb[20].mxu0 %vm499_vm0, %v1554_v24 }
  0x44   : > { %1458 = vmatmul.mubr.msk.bf16.gmra.mrb[20].mxu1 %vm499_vm0, %v1555_v25  ;;  %1429 = vmatprep.mubr.msk.bf16.mxu0 %vm499_vm0, %v1556_v26 }
  0x45   : > { %1461 = vmatprep.mubr.msk.bf16.mxu1 %vm499_vm0, %v1557_v27 }
  0x4b   : > { %1430 = vmatmul.mubr.msk.bf16.gmra.mrb[24].mxu0 %vm499_vm0, %v1558_v28 }
  0x4c   : > { %1462 = vmatmul.mubr.msk.bf16.gmra.mrb[24].mxu1 %vm499_vm0, %v1559_v29  ;;  %1433 = vmatprep.mubr.msk.bf16.mxu0 %vm499_vm0, %v1560_v30 }
  0x4d   : > { %1465 = vmatprep.mubr.msk.bf16.mxu1 %vm499_vm0, %v1561_v31 }
  0x53   : > { %1434 = vmatmul.mubr.msk.bf16.gmra.mrb[28].mxu0 %vm499_vm0, %v1562_v32 }
  0x54   : > { %1466 = vmatmul.mubr.msk.bf16.gmra.mrb[28].mxu1 %vm499_vm0, %v1563_v33 }
  0xee   : > { %v1407_v35 = vpop.f32.mrb[0].mxu0 }
  0xef   : > { %v894_v37 = vmul.f32 %v1407_v35, %v1807_v34  ;;  %v1439_v38 = vpop.f32.mrb[0].mxu1  ;;  %v630_v39 = vpop.f32.mrb[1].mxu0 }
  0xf0   : > { %v926_v40 = vmul.f32 %v1439_v38, %v1807_v34  ;;  %v892_v41 = vmul.f32 %v1807_v34, %v630_v39  ;;  %v758_v42 = vpop.f32.mrb[1].mxu1  ;;  %v1408_v43 = vpop.f32.mrb[2].mxu0 }
  0xf1   : > { %v965_v44 = vadd.f32 %v1812_v36, %v894_v37  ;;  %v924_v45 = vmul.f32 %v1807_v34, %v758_v42  ;;  %v895_v46 = vmul.f32 %v1408_v43, %v1807_v34  ;;  %v1440_v47 = vpop.f32.mrb[2].mxu1  ;;  %v633_v48 = vpop.f32.mrb[3].mxu0 }
  0xf2   : > { %v997_v49 = vadd.f32 %v1812_v36, %v926_v40  ;;  %v963_v50 = vadd.f32 %v1812_v36, %v892_v41  ;;  %v927_v51 = vmul.f32 %v1440_v47, %v1807_v34  ;;  %v893_v52 = vmul.f32 %v1807_v34, %v633_v48  ;;  %v761_v53 = vpop.f32.mrb[3].mxu1 }
  0xf3   : > { %v1029_v54 = vmax.f32 %v965_v44, 0.0  ;;  %v995_v55 = vadd.f32 %v1812_v36, %v924_v45  ;;  %v966_v56 = vadd.f32 %v1812_v36, %v895_v46  ;;  %v925_v57 = vmul.f32 %v1807_v34, %v761_v53 }
  0xf4   : > { %v1061_v58 = vmax.f32 %v997_v49, 0.0  ;;  %v1027_v59 = vmax.f32 %v963_v50, 0.0  ;;  %v998_v60 = vadd.f32 %v1812_v36, %v927_v51  ;;  %v964_v61 = vadd.f32 %v1812_v36, %v893_v52 }
  0xf5   : > { %1094 = vst.msk [vmem:[%s1831_s26 + $0x10] sm:$0xff] %vm1091_vm1, %v1029_v54  ;;  %v1059_v62 = vmax.f32 %v995_v55, 0.0  ;;  %v1030_v63 = vmax.f32 %v966_v56, 0.0  ;;  %v996_v0 = vadd.f32 %v1812_v36, %v925_v57 }
  0xf6   : > { %1126 = vst.msk [vmem:[%s1831_s26 + $0x110] sm:$0xff] %vm1091_vm1, %v1061_v58  ;;  %1092 = vst.msk [vmem:[%s1831_s26] sm:$0xff] %vm1091_vm1, %v1027_v59  ;;  %v1062_v1 = vmax.f32 %v998_v60, 0.0  ;;  %v1028_v2 = vmax.f32 %v964_v61, 0.0  ;;  %v1411_v3 = vpop.f32.mrb[4].mxu0 }
  0xf7   : > { %1124 = vst.msk [vmem:[%s1831_s26 + $0x100] sm:$0xff] %vm1091_vm1, %v1059_v62  ;;  %1095 = vst.msk [vmem:[%s1831_s26 + $0x18] sm:$0xff] %vm1091_vm1, %v1030_v63  ;;  %v1060_v4 = vmax.f32 %v996_v0, 0.0  ;;  %v898_v5 = vmul.f32 %v1411_v3, %v1807_v34  ;;  %v1443_v6 = vpop.f32.mrb[4].mxu1  ;;  %v646_v7 = vpop.f32.mrb[5].mxu0 }
  0xf8   : > { %1127 = vst.msk [vmem:[%s1831_s26 + $0x118] sm:$0xff] %vm1091_vm1, %v1062_v1  ;;  %1093 = vst.msk [vmem:[%s1831_s26 + $0x8] sm:$0xff] %vm1091_vm1, %v1028_v2  ;;  %v930_v8 = vmul.f32 %v1443_v6, %v1807_v34  ;;  %v896_v9 = vmul.f32 %v1807_v34, %v646_v7  ;;  %v774_v10 = vpop.f32.mrb[5].mxu1  ;;  %v1412_v11 = vpop.f32.mrb[6].mxu0 }
  0xf9   : > { %1125 = vst.msk [vmem:[%s1831_s26 + $0x108] sm:$0xff] %vm1091_vm1, %v1060_v4  ;;  %v969_v12 = vadd.f32 %v1812_v36, %v898_v5  ;;  %v928_v13 = vmul.f32 %v1807_v34, %v774_v10  ;;  %v899_v14 = vmul.f32 %v1412_v11, %v1807_v34  ;;  %v1444_v15 = vpop.f32.mrb[6].mxu1  ;;  %v649_v16 = vpop.f32.mrb[7].mxu0 }
  0xfa   : > { %v1001_v17 = vadd.f32 %v1812_v36, %v930_v8  ;;  %v967_v18 = vadd.f32 %v1812_v36, %v896_v9  ;;  %v931_v19 = vmul.f32 %v1444_v15, %v1807_v34  ;;  %v897_v20 = vmul.f32 %v1807_v34, %v649_v16  ;;  %v777_v21 = vpop.f32.mrb[7].mxu1 }
  0xfb   : > { %v1033_v22 = vmax.f32 %v969_v12, 0.0  ;;  %v999_v23 = vadd.f32 %v1812_v36, %v928_v13  ;;  %v970_v24 = vadd.f32 %v1812_v36, %v899_v14  ;;  %v929_v25 = vmul.f32 %v1807_v34, %v777_v21 }
  0xfc   : > { %v1065_v26 = vmax.f32 %v1001_v17, 0.0  ;;  %v1031_v27 = vmax.f32 %v967_v18, 0.0  ;;  %v1002_v28 = vadd.f32 %v1812_v36, %v931_v19  ;;  %v968_v29 = vadd.f32 %v1812_v36, %v897_v20 }
  0xfd   : > { %1098 = vst.msk [vmem:[%s1831_s26 + $0x30] sm:$0xff] %vm1091_vm1, %v1033_v22  ;;  %v1063_v30 = vmax.f32 %v999_v23, 0.0  ;;  %v1034_v31 = vmax.f32 %v970_v24, 0.0  ;;  %v1000_v32 = vadd.f32 %v1812_v36, %v929_v25 }
  0xfe   : > { %1130 = vst.msk [vmem:[%s1831_s26 + $0x130] sm:$0xff] %vm1091_vm1, %v1065_v26  ;;  %1096 = vst.msk [vmem:[%s1831_s26 + $0x20] sm:$0xff] %vm1091_vm1, %v1031_v27  ;;  %v1066_v33 = vmax.f32 %v1002_v28, 0.0  ;;  %v1032_v35 = vmax.f32 %v968_v29, 0.0  ;;  %v1415_v37 = vpop.f32.mrb[8].mxu0 }
  0xff   : > { %1128 = vst.msk [vmem:[%s1831_s26 + $0x120] sm:$0xff] %vm1091_vm1, %v1063_v30  ;;  %1099 = vst.msk [vmem:[%s1831_s26 + $0x38] sm:$0xff] %vm1091_vm1, %v1034_v31  ;;  %v1064_v38 = vmax.f32 %v1000_v32, 0.0  ;;  %v902_v39 = vmul.f32 %v1415_v37, %v1807_v34  ;;  %v1447_v40 = vpop.f32.mrb[8].mxu1  ;;  %v662_v41 = vpop.f32.mrb[9].mxu0 }
 0x100   : > { %1131 = vst.msk [vmem:[%s1831_s26 + $0x138] sm:$0xff] %vm1091_vm1, %v1066_v33  ;;  %1097 = vst.msk [vmem:[%s1831_s26 + $0x28] sm:$0xff] %vm1091_vm1, %v1032_v35  ;;  %v934_v42 = vmul.f32 %v1447_v40, %v1807_v34  ;;  %v900_v43 = vmul.f32 %v1807_v34, %v662_v41  ;;  %v790_v44 = vpop.f32.mrb[9].mxu1  ;;  %v1416_v45 = vpop.f32.mrb[10].mxu0 }
 0x101   : > { %1129 = vst.msk [vmem:[%s1831_s26 + $0x128] sm:$0xff] %vm1091_vm1, %v1064_v38  ;;  %v973_v46 = vadd.f32 %v1812_v36, %v902_v39  ;;  %v932_v47 = vmul.f32 %v1807_v34, %v790_v44  ;;  %v903_v48 = vmul.f32 %v1416_v45, %v1807_v34  ;;  %v1448_v49 = vpop.f32.mrb[10].mxu1  ;;  %v665_v50 = vpop.f32.mrb[11].mxu0 }
 0x102   : > { %v1005_v51 = vadd.f32 %v1812_v36, %v934_v42  ;;  %v971_v52 = vadd.f32 %v1812_v36, %v900_v43  ;;  %v935_v53 = vmul.f32 %v1448_v49, %v1807_v34  ;;  %v901_v54 = vmul.f32 %v1807_v34, %v665_v50  ;;  %v793_v55 = vpop.f32.mrb[11].mxu1 }
 0x103   : > { %v1037_v56 = vmax.f32 %v973_v46, 0.0  ;;  %v1003_v57 = vadd.f32 %v1812_v36, %v932_v47  ;;  %v974_v58 = vadd.f32 %v1812_v36, %v903_v48  ;;  %v933_v59 = vmul.f32 %v1807_v34, %v793_v55 }
 0x104   : > { %v1069_v60 = vmax.f32 %v1005_v51, 0.0  ;;  %v1035_v61 = vmax.f32 %v971_v52, 0.0  ;;  %v1006_v62 = vadd.f32 %v1812_v36, %v935_v53  ;;  %v972_v63 = vadd.f32 %v1812_v36, %v901_v54 }
 0x105   : > { %1102 = vst.msk [vmem:[%s1831_s26 + $0x50] sm:$0xff] %vm1091_vm1, %v1037_v56  ;;  %v1067_v0 = vmax.f32 %v1003_v57, 0.0  ;;  %v1038_v1 = vmax.f32 %v974_v58, 0.0  ;;  %v1004_v2 = vadd.f32 %v1812_v36, %v933_v59 }
 0x106   : > { %1134 = vst.msk [vmem:[%s1831_s26 + $0x150] sm:$0xff] %vm1091_vm1, %v1069_v60  ;;  %1100 = vst.msk [vmem:[%s1831_s26 + $0x40] sm:$0xff] %vm1091_vm1, %v1035_v61  ;;  %v1070_v3 = vmax.f32 %v1006_v62, 0.0  ;;  %v1036_v4 = vmax.f32 %v972_v63, 0.0  ;;  %v1419_v5 = vpop.f32.mrb[12].mxu0 }
 0x107   : > { %1132 = vst.msk [vmem:[%s1831_s26 + $0x140] sm:$0xff] %vm1091_vm1, %v1067_v0  ;;  %1103 = vst.msk [vmem:[%s1831_s26 + $0x58] sm:$0xff] %vm1091_vm1, %v1038_v1  ;;  %v1068_v6 = vmax.f32 %v1004_v2, 0.0  ;;  %v906_v7 = vmul.f32 %v1419_v5, %v1807_v34  ;;  %v1451_v8 = vpop.f32.mrb[12].mxu1  ;;  %v678_v9 = vpop.f32.mrb[13].mxu0 }
 0x108   : > { %1135 = vst.msk [vmem:[%s1831_s26 + $0x158] sm:$0xff] %vm1091_vm1, %v1070_v3  ;;  %1101 = vst.msk [vmem:[%s1831_s26 + $0x48] sm:$0xff] %vm1091_vm1, %v1036_v4  ;;  %v938_v10 = vmul.f32 %v1451_v8, %v1807_v34  ;;  %v904_v11 = vmul.f32 %v1807_v34, %v678_v9  ;;  %v806_v12 = vpop.f32.mrb[13].mxu1  ;;  %v1420_v13 = vpop.f32.mrb[14].mxu0 }
 0x109   : > { %1133 = vst.msk [vmem:[%s1831_s26 + $0x148] sm:$0xff] %vm1091_vm1, %v1068_v6  ;;  %v977_v14 = vadd.f32 %v1812_v36, %v906_v7  ;;  %v936_v15 = vmul.f32 %v1807_v34, %v806_v12  ;;  %v907_v16 = vmul.f32 %v1420_v13, %v1807_v34  ;;  %v1452_v17 = vpop.f32.mrb[14].mxu1  ;;  %v681_v18 = vpop.f32.mrb[15].mxu0 }
 0x10a   : > { %v1009_v19 = vadd.f32 %v1812_v36, %v938_v10  ;;  %v975_v20 = vadd.f32 %v1812_v36, %v904_v11  ;;  %v939_v21 = vmul.f32 %v1452_v17, %v1807_v34  ;;  %v905_v22 = vmul.f32 %v1807_v34, %v681_v18  ;;  %v809_v23 = vpop.f32.mrb[15].mxu1 }
 0x10b   : > { %v1041_v24 = vmax.f32 %v977_v14, 0.0  ;;  %v1007_v25 = vadd.f32 %v1812_v36, %v936_v15  ;;  %v978_v26 = vadd.f32 %v1812_v36, %v907_v16  ;;  %v937_v27 = vmul.f32 %v1807_v34, %v809_v23 }
 0x10c   : > { %v1073_v28 = vmax.f32 %v1009_v19, 0.0  ;;  %v1039_v29 = vmax.f32 %v975_v20, 0.0  ;;  %v1010_v30 = vadd.f32 %v1812_v36, %v939_v21  ;;  %v976_v31 = vadd.f32 %v1812_v36, %v905_v22 }
 0x10d   : > { %1106 = vst.msk [vmem:[%s1831_s26 + $0x70] sm:$0xff] %vm1091_vm1, %v1041_v24  ;;  %v1071_v32 = vmax.f32 %v1007_v25, 0.0  ;;  %v1042_v33 = vmax.f32 %v978_v26, 0.0  ;;  %v1008_v35 = vadd.f32 %v1812_v36, %v937_v27 }
 0x10e   : > { %1138 = vst.msk [vmem:[%s1831_s26 + $0x170] sm:$0xff] %vm1091_vm1, %v1073_v28  ;;  %1104 = vst.msk [vmem:[%s1831_s26 + $0x60] sm:$0xff] %vm1091_vm1, %v1039_v29  ;;  %v1074_v37 = vmax.f32 %v1010_v30, 0.0  ;;  %v1040_v38 = vmax.f32 %v976_v31, 0.0  ;;  %v1423_v39 = vpop.f32.mrb[16].mxu0 }
 0x10f   : > { %1136 = vst.msk [vmem:[%s1831_s26 + $0x160] sm:$0xff] %vm1091_vm1, %v1071_v32  ;;  %1107 = vst.msk [vmem:[%s1831_s26 + $0x78] sm:$0xff] %vm1091_vm1, %v1042_v33  ;;  %v1072_v40 = vmax.f32 %v1008_v35, 0.0  ;;  %v910_v41 = vmul.f32 %v1423_v39, %v1807_v34  ;;  %v1455_v42 = vpop.f32.mrb[16].mxu1  ;;  %v694_v43 = vpop.f32.mrb[17].mxu0 }
 0x110   : > { %1139 = vst.msk [vmem:[%s1831_s26 + $0x178] sm:$0xff] %vm1091_vm1, %v1074_v37  ;;  %1105 = vst.msk [vmem:[%s1831_s26 + $0x68] sm:$0xff] %vm1091_vm1, %v1040_v38  ;;  %v942_v44 = vmul.f32 %v1455_v42, %v1807_v34  ;;  %v908_v45 = vmul.f32 %v1807_v34, %v694_v43  ;;  %v822_v46 = vpop.f32.mrb[17].mxu1  ;;  %v1424_v47 = vpop.f32.mrb[18].mxu0 }
 0x111   : > { %1137 = vst.msk [vmem:[%s1831_s26 + $0x168] sm:$0xff] %vm1091_vm1, %v1072_v40  ;;  %v981_v48 = vadd.f32 %v1812_v36, %v910_v41  ;;  %v940_v49 = vmul.f32 %v1807_v34, %v822_v46  ;;  %v911_v50 = vmul.f32 %v1424_v47, %v1807_v34  ;;  %v1456_v51 = vpop.f32.mrb[18].mxu1  ;;  %v697_v52 = vpop.f32.mrb[19].mxu0 }
 0x112   : > { %v1013_v53 = vadd.f32 %v1812_v36, %v942_v44  ;;  %v979_v54 = vadd.f32 %v1812_v36, %v908_v45  ;;  %v943_v55 = vmul.f32 %v1456_v51, %v1807_v34  ;;  %v909_v56 = vmul.f32 %v1807_v34, %v697_v52  ;;  %v825_v57 = vpop.f32.mrb[19].mxu1 }
 0x113   : > { %v1045_v58 = vmax.f32 %v981_v48, 0.0  ;;  %v1011_v59 = vadd.f32 %v1812_v36, %v940_v49  ;;  %v982_v60 = vadd.f32 %v1812_v36, %v911_v50  ;;  %v941_v61 = vmul.f32 %v1807_v34, %v825_v57 }
 0x114   : > { %v1077_v62 = vmax.f32 %v1013_v53, 0.0  ;;  %v1043_v63 = vmax.f32 %v979_v54, 0.0  ;;  %v1014_v0 = vadd.f32 %v1812_v36, %v943_v55  ;;  %v980_v1 = vadd.f32 %v1812_v36, %v909_v56 }
 0x115   : > { %1110 = vst.msk [vmem:[%s1831_s26 + $0x90] sm:$0xff] %vm1091_vm1, %v1045_v58  ;;  %v1075_v2 = vmax.f32 %v1011_v59, 0.0  ;;  %v1046_v3 = vmax.f32 %v982_v60, 0.0  ;;  %v1012_v4 = vadd.f32 %v1812_v36, %v941_v61 }
 0x116   : > { %1142 = vst.msk [vmem:[%s1831_s26 + $0x190] sm:$0xff] %vm1091_vm1, %v1077_v62  ;;  %1108 = vst.msk [vmem:[%s1831_s26 + $0x80] sm:$0xff] %vm1091_vm1, %v1043_v63  ;;  %v1078_v5 = vmax.f32 %v1014_v0, 0.0  ;;  %v1044_v6 = vmax.f32 %v980_v1, 0.0  ;;  %v1427_v7 = vpop.f32.mrb[20].mxu0 }
 0x117   : > { %1140 = vst.msk [vmem:[%s1831_s26 + $0x180] sm:$0xff] %vm1091_vm1, %v1075_v2  ;;  %1111 = vst.msk [vmem:[%s1831_s26 + $0x98] sm:$0xff] %vm1091_vm1, %v1046_v3  ;;  %v1076_v8 = vmax.f32 %v1012_v4, 0.0  ;;  %v914_v9 = vmul.f32 %v1427_v7, %v1807_v34  ;;  %v1459_v10 = vpop.f32.mrb[20].mxu1  ;;  %v710_v11 = vpop.f32.mrb[21].mxu0 }
 0x118   : > { %1143 = vst.msk [vmem:[%s1831_s26 + $0x198] sm:$0xff] %vm1091_vm1, %v1078_v5  ;;  %1109 = vst.msk [vmem:[%s1831_s26 + $0x88] sm:$0xff] %vm1091_vm1, %v1044_v6  ;;  %v946_v12 = vmul.f32 %v1459_v10, %v1807_v34  ;;  %v912_v13 = vmul.f32 %v1807_v34, %v710_v11  ;;  %v838_v14 = vpop.f32.mrb[21].mxu1  ;;  %v1428_v15 = vpop.f32.mrb[22].mxu0 }
 0x119   : > { %1141 = vst.msk [vmem:[%s1831_s26 + $0x188] sm:$0xff] %vm1091_vm1, %v1076_v8  ;;  %v985_v16 = vadd.f32 %v1812_v36, %v914_v9  ;;  %v944_v17 = vmul.f32 %v1807_v34, %v838_v14  ;;  %v915_v18 = vmul.f32 %v1428_v15, %v1807_v34  ;;  %v1460_v19 = vpop.f32.mrb[22].mxu1  ;;  %v713_v20 = vpop.f32.mrb[23].mxu0 }
 0x11a   : > { %v1017_v21 = vadd.f32 %v1812_v36, %v946_v12  ;;  %v983_v22 = vadd.f32 %v1812_v36, %v912_v13  ;;  %v947_v23 = vmul.f32 %v1460_v19, %v1807_v34  ;;  %v913_v24 = vmul.f32 %v1807_v34, %v713_v20  ;;  %v841_v25 = vpop.f32.mrb[23].mxu1 }
 0x11b   : > { %v1049_v26 = vmax.f32 %v985_v16, 0.0  ;;  %v1015_v27 = vadd.f32 %v1812_v36, %v944_v17  ;;  %v986_v28 = vadd.f32 %v1812_v36, %v915_v18  ;;  %v945_v29 = vmul.f32 %v1807_v34, %v841_v25 }
 0x11c   : > { %v1081_v30 = vmax.f32 %v1017_v21, 0.0  ;;  %v1047_v31 = vmax.f32 %v983_v22, 0.0  ;;  %v1018_v32 = vadd.f32 %v1812_v36, %v947_v23  ;;  %v984_v33 = vadd.f32 %v1812_v36, %v913_v24 }
 0x11d   : > { %1114 = vst.msk [vmem:[%s1831_s26 + $0xb0] sm:$0xff] %vm1091_vm1, %v1049_v26  ;;  %v1079_v35 = vmax.f32 %v1015_v27, 0.0  ;;  %v1050_v37 = vmax.f32 %v986_v28, 0.0  ;;  %v1016_v38 = vadd.f32 %v1812_v36, %v945_v29 }
 0x11e   : > { %1146 = vst.msk [vmem:[%s1831_s26 + $0x1b0] sm:$0xff] %vm1091_vm1, %v1081_v30  ;;  %1112 = vst.msk [vmem:[%s1831_s26 + $0xa0] sm:$0xff] %vm1091_vm1, %v1047_v31  ;;  %v1082_v39 = vmax.f32 %v1018_v32, 0.0  ;;  %v1048_v40 = vmax.f32 %v984_v33, 0.0  ;;  %v1431_v41 = vpop.f32.mrb[24].mxu0 }
 0x11f   : > { %1144 = vst.msk [vmem:[%s1831_s26 + $0x1a0] sm:$0xff] %vm1091_vm1, %v1079_v35  ;;  %1115 = vst.msk [vmem:[%s1831_s26 + $0xb8] sm:$0xff] %vm1091_vm1, %v1050_v37  ;;  %v1080_v42 = vmax.f32 %v1016_v38, 0.0  ;;  %v918_v43 = vmul.f32 %v1431_v41, %v1807_v34  ;;  %v1463_v44 = vpop.f32.mrb[24].mxu1  ;;  %v726_v45 = vpop.f32.mrb[25].mxu0 }
 0x120   : > { %1147 = vst.msk [vmem:[%s1831_s26 + $0x1b8] sm:$0xff] %vm1091_vm1, %v1082_v39  ;;  %1113 = vst.msk [vmem:[%s1831_s26 + $0xa8] sm:$0xff] %vm1091_vm1, %v1048_v40  ;;  %v950_v46 = vmul.f32 %v1463_v44, %v1807_v34  ;;  %v916_v47 = vmul.f32 %v1807_v34, %v726_v45  ;;  %v854_v48 = vpop.f32.mrb[25].mxu1  ;;  %v1432_v49 = vpop.f32.mrb[26].mxu0 }
 0x121   : > { %1145 = vst.msk [vmem:[%s1831_s26 + $0x1a8] sm:$0xff] %vm1091_vm1, %v1080_v42  ;;  %v989_v50 = vadd.f32 %v1812_v36, %v918_v43  ;;  %v948_v51 = vmul.f32 %v1807_v34, %v854_v48  ;;  %v919_v52 = vmul.f32 %v1432_v49, %v1807_v34  ;;  %v1464_v53 = vpop.f32.mrb[26].mxu1  ;;  %v729_v54 = vpop.f32.mrb[27].mxu0 }
 0x122   : > { %v1021_v55 = vadd.f32 %v1812_v36, %v950_v46  ;;  %v987_v56 = vadd.f32 %v1812_v36, %v916_v47  ;;  %v951_v57 = vmul.f32 %v1464_v53, %v1807_v34  ;;  %v917_v58 = vmul.f32 %v1807_v34, %v729_v54  ;;  %v857_v59 = vpop.f32.mrb[27].mxu1 }
 0x123   : > { %v1053_v60 = vmax.f32 %v989_v50, 0.0  ;;  %v1019_v61 = vadd.f32 %v1812_v36, %v948_v51  ;;  %v990_v62 = vadd.f32 %v1812_v36, %v919_v52  ;;  %v949_v63 = vmul.f32 %v1807_v34, %v857_v59 }
 0x124   : > { %v1085_v0 = vmax.f32 %v1021_v55, 0.0  ;;  %v1051_v1 = vmax.f32 %v987_v56, 0.0  ;;  %v1022_v2 = vadd.f32 %v1812_v36, %v951_v57  ;;  %v988_v3 = vadd.f32 %v1812_v36, %v917_v58 }
 0x125   : > { %1118 = vst.msk [vmem:[%s1831_s26 + $0xd0] sm:$0xff] %vm1091_vm1, %v1053_v60  ;;  %v1083_v4 = vmax.f32 %v1019_v61, 0.0  ;;  %v1054_v5 = vmax.f32 %v990_v62, 0.0  ;;  %v1020_v6 = vadd.f32 %v1812_v36, %v949_v63 }
 0x126   : > { %1150 = vst.msk [vmem:[%s1831_s26 + $0x1d0] sm:$0xff] %vm1091_vm1, %v1085_v0  ;;  %1116 = vst.msk [vmem:[%s1831_s26 + $0xc0] sm:$0xff] %vm1091_vm1, %v1051_v1  ;;  %v1086_v7 = vmax.f32 %v1022_v2, 0.0  ;;  %v1052_v8 = vmax.f32 %v988_v3, 0.0  ;;  %v1435_v9 = vpop.f32.mrb[28].mxu0 }
 0x127   : > { %1148 = vst.msk [vmem:[%s1831_s26 + $0x1c0] sm:$0xff] %vm1091_vm1, %v1083_v4  ;;  %1119 = vst.msk [vmem:[%s1831_s26 + $0xd8] sm:$0xff] %vm1091_vm1, %v1054_v5  ;;  %v1084_v10 = vmax.f32 %v1020_v6, 0.0  ;;  %v922_v11 = vmul.f32 %v1435_v9, %v1807_v34  ;;  %v1467_v12 = vpop.f32.mrb[28].mxu1  ;;  %v742_v13 = vpop.f32.mrb[29].mxu0 }
 0x128   : > { %1151 = vst.msk [vmem:[%s1831_s26 + $0x1d8] sm:$0xff] %vm1091_vm1, %v1086_v7  ;;  %1117 = vst.msk [vmem:[%s1831_s26 + $0xc8] sm:$0xff] %vm1091_vm1, %v1052_v8  ;;  %v954_v14 = vmul.f32 %v1467_v12, %v1807_v34  ;;  %v920_v15 = vmul.f32 %v1807_v34, %v742_v13  ;;  %v870_v16 = vpop.f32.mrb[29].mxu1  ;;  %v1436_v17 = vpop.f32.mrb[30].mxu0 }
 0x129   : > { %1149 = vst.msk [vmem:[%s1831_s26 + $0x1c8] sm:$0xff] %vm1091_vm1, %v1084_v10  ;;  %v993_v18 = vadd.f32 %v1812_v36, %v922_v11  ;;  %v952_v19 = vmul.f32 %v1807_v34, %v870_v16  ;;  %v923_v20 = vmul.f32 %v1436_v17, %v1807_v34  ;;  %v1468_v21 = vpop.f32.mrb[30].mxu1  ;;  %v745_v22 = vpop.f32.mrb[31].mxu0 }
 0x12a   : > { %v1025_v23 = vadd.f32 %v1812_v36, %v954_v14  ;;  %v991_v24 = vadd.f32 %v1812_v36, %v920_v15  ;;  %v955_v25 = vmul.f32 %v1468_v21, %v1807_v34  ;;  %v921_v26 = vmul.f32 %v1807_v34, %v745_v22  ;;  %v873_v27 = vpop.f32.mrb[31].mxu1 }
 0x12b   : > { %v1057_v28 = vmax.f32 %v993_v18, 0.0  ;;  %v1023_v29 = vadd.f32 %v1812_v36, %v952_v19  ;;  %v994_v30 = vadd.f32 %v1812_v36, %v923_v20  ;;  %v953_v31 = vmul.f32 %v1807_v34, %v873_v27 }
 0x12c   : > { %v1089_v32 = vmax.f32 %v1025_v23, 0.0  ;;  %v1055_v33 = vmax.f32 %v991_v24, 0.0  ;;  %v1026_v35 = vadd.f32 %v1812_v36, %v955_v25  ;;  %v992_v37 = vadd.f32 %v1812_v36, %v921_v26 }
 0x12d   : > { %1122 = vst.msk [vmem:[%s1831_s26 + $0xf0] sm:$0xff] %vm1091_vm1, %v1057_v28  ;;  %v1087_v38 = vmax.f32 %v1023_v29, 0.0  ;;  %v1058_v39 = vmax.f32 %v994_v30, 0.0  ;;  %v1024_v34 = vadd.f32 %v1812_v36, %v953_v31 }
 0x12e   : > { %1154 = vst.msk [vmem:[%s1831_s26 + $0x1f0] sm:$0xff] %vm1091_vm1, %v1089_v32  ;;  %1120 = vst.msk [vmem:[%s1831_s26 + $0xe0] sm:$0xff] %vm1091_vm1, %v1055_v33  ;;  %v1090_v40 = vmax.f32 %v1026_v35, 0.0  ;;  %v1056_v41 = vmax.f32 %v992_v37, 0.0 }
 0x12f   : > { %1152 = vst.msk [vmem:[%s1831_s26 + $0x1e0] sm:$0xff] %vm1091_vm1, %v1087_v38  ;;  %1123 = vst.msk [vmem:[%s1831_s26 + $0xf8] sm:$0xff] %vm1091_vm1, %v1058_v39  ;;  %v1088_v36 = vmax.f32 %v1024_v34, 0.0 }
 0x130   : > { %1155 = vst.msk [vmem:[%s1831_s26 + $0x1f8] sm:$0xff] %vm1091_vm1, %v1090_v40  ;;  %1121 = vst.msk [vmem:[%s1831_s26 + $0xe8] sm:$0xff] %vm1091_vm1, %v1056_v41 }
 0x131   : > { %1153 = vst.msk [vmem:[%s1831_s26 + $0x1e8] sm:$0xff] %vm1091_vm1, %v1088_v36 }
 0x132   : > { %1577 = shalt.err (!%p1574_p5)
}
 0x133   : > { %s1578_s12 = scalar_lea.hbm %s2069_s6, 8192  ;;  %s1582_s21 = scalar_lea.hbm %s2135_s4, 1982464 }
 0x134   : > { %p1579_p6 = scmp.ne.s32.totalorder %s2069_s6, %s1578_s12  ;;  %p1583_p10 = scmp.lt.u32.totalorder %s2069_s6, %s2135_s4 }
 0x135   : > { %p1584_p11 = scmp.lt.u32.totalorder %s1582_s21, %s1578_s12  ;;  %p1586_p13 = scmp.lt.u32.totalorder %s1578_s12, %s2069_s6 }
 0x136   : > { %p1580_p7 = pnand %p1579_p6, %p1712_p4 }
 0x137   : > { %p1585_p12 = por %p1584_p11, %p1583_p10 }
 0x138   : > { %p1581_p9 = pneg %p1580_p7 }
 0x139   : > { %p1587_p0 = por %p1586_p13, %p1585_p12 }
 0x13b   : > { %p1588_p1 = pnand %p1587_p0, %p1581_p9 }
 0x13d   : > { %1591 = shalt.err (!%p1588_p1)
}
 0x13e   : > { %s1645_s26 = smov 128   ;;  %s1646_s29 = smov 8  }
 0x13f   : > { %1473 = dma.vmem_to_hbm [thread:$0]  (%p1712_p4), %s2071_s30, 8192, %s2069_s6, %s2085_s7, %s1645_s26, %s1645_s26, %s1646_s29  }
 0x140 PF: > { %p1479_p2 = scmp.ge.s32.totalorder %s1642_s20, 2  ;;  %s1186_s18 = sand.u32 1, %s1622_s15  }
 0x141   : > { %s1187_s5 = scalar_lea.sflag [#allocation3], %s1186_s18 }
 0x142   : > { %p1476_p3 = pnand %p1479_p2, %p1719_p8 }
 0x144   : > { %1617 = dma.done.wait (!%p1476_p3), %s1187_s5, 8192  }
 0x145   : > { %1619 = vsyncadd (!%p1476_p3), %s1187_s5, 4294959104  ;;  %s17_s20 = sadd.s32 1, %s1642_s20   ;;  %s2138_s15 = smov %s1626_s16 }
 0x146   : > { %p14_p5 = scmp.ge.s32.totalorder %s17_s20, 244   ;;  %s2139_s16 = smov %s1630_s17 }
 0x147   : > { %s2140_s17 = smov %s1725_s28  ;;  %s2141_s18 = smov %s1638_s19 }
 0x148   : > { %s2142_s19 = smov %s2144_s23  ;;  %16 = sbr.rel (!%p14_p5) target bundleno = 4 (0x4), region = 80 }
 0x14f   :  { %1192 = vsyncpa [#allocation3], 1 }
 0x150   :  { %1194 = vsyncpa [#allocation3 + $0x1], 1 }

</bundles_post_ra>
